<compile_context>
chip_gen: v5e
topology: v5e:2x2
jax: 0.10.0
libtpu: 0.0.40
codegen_flags: <defaults>
</compile_context>

<pallas_src>
import jax
import jax.numpy as jnp
from jax.experimental import pallas as pl
from jax.experimental.pallas import tpu as pltpu

IGNORE_INDEX = 255


def _round_up(x, m):
    return (x + m - 1) // m * m


def _ce_kernel(x_ref, t_ref, sum_ref, cnt_ref, acc_loss, acc_cnt):
    # x_ref:   (1, C, TILE)  logits block (pixels lane-dense, classes on sublanes)
    # t_ref:   (1, 1, TILE)  int32 targets block
    # sum_ref: (1, 1, 1)     per-image partial loss sum (output)
    # cnt_ref: (1, 1, 1)     per-image valid-pixel count (output)
    # acc_*:   (1, 1, TILE)  f32 wide accumulators (VMEM scratch, persist across p)
    p = pl.program_id(1)

    @pl.when(p == 0)
    def _():
        acc_loss[...] = jnp.zeros_like(acc_loss)
        acc_cnt[...] = jnp.zeros_like(acc_cnt)

    x = x_ref[...].astype(jnp.float32)   # (1, C, TILE)
    t = t_ref[...]                       # (1, 1, TILE) int32
    num_classes = x.shape[1]

    # Unrolled running max over the (small, static) class axis — elementwise VPU ops.
    m = x[:, 0:1, :]
    for c in range(1, num_classes):
        m = jnp.maximum(m, x[:, c:c + 1, :])

    # Fused exp-sum and target-logit gather in one unrolled class loop.
    s = jnp.zeros_like(m)
    xt = jnp.zeros_like(m)
    for c in range(num_classes):
        xc = x[:, c:c + 1, :]
        s = s + jnp.exp(xc - m)
        xt = xt + jnp.where(t == c, xc, 0.0)

    valid = t != IGNORE_INDEX
    # NLL = logsumexp(x) - x[target] = (m - x_t) + log(sum exp(x - m)); masked for ignore/pad.
    loss = jnp.where(valid, (m - xt) + jnp.log(s), 0.0)

    acc_loss[...] += loss
    acc_cnt[...] += valid.astype(jnp.float32)

    # One cross-lane reduction + store, only on the last pixel tile of this image.
    @pl.when(p == pl.num_programs(1) - 1)
    def _():
        sum_ref[...] = jnp.sum(acc_loss[...], keepdims=True)
        cnt_ref[...] = jnp.sum(acc_cnt[...], keepdims=True)


def _pick_tile_hw(hw, num_classes, itemsize):
    # Budget ~8 MiB for the double-buffered logits + targets tiles so the kernel fits
    # the default scoped-VMEM on every generation (16 MiB v5e, 32 MiB v6e/v7x).
    budget = 8 * 1024 * 1024
    per_pixel = 2 * (num_classes * itemsize + 4)   # double-buffered logits + int32 target
    cap = max(128, (min(budget // per_pixel, 32768) // 128) * 128)
    return min(cap, _round_up(hw, 128))


def cross_entropy_loss(logits_nchw, targets_nhw):
    """Matches torch.nn.CrossEntropyLoss(weight=None, ignore_index=255)(inputs, targets)."""
    N, C, H, W = logits_nchw.shape
    HW = H * W

    # Native layout: reshape only (free), no transpose; keep the input dtype.
    x = logits_nchw.reshape(N, C, HW)
    t = targets_nhw.reshape(N, 1, HW).astype(jnp.int32)

    # Lane-dense pixel tile (multiple of 128); pad the pixel axis with ignore_index so
    # the grid divides evenly and padded pixels contribute 0 to both sum and count.
    tile_hw = _pick_tile_hw(HW, C, x.dtype.itemsize)
    hw_pad = _round_up(HW, tile_hw)
    if hw_pad != HW:
        x = jnp.pad(x, ((0, 0), (0, 0), (0, hw_pad - HW)))
        t = jnp.pad(t, ((0, 0), (0, 0), (0, hw_pad - HW)),
                    constant_values=IGNORE_INDEX)
    num_p = hw_pad // tile_hw

    loss_sum, valid_cnt = pl.pallas_call(
        _ce_kernel,
        out_shape=(
            jax.ShapeDtypeStruct((N, 1, 1), jnp.float32),
            jax.ShapeDtypeStruct((N, 1, 1), jnp.float32),
        ),
        grid_spec=pltpu.PrefetchScalarGridSpec(
            num_scalar_prefetch=0,
            grid=(N, num_p),
            in_specs=[
                pl.BlockSpec((1, C, tile_hw), lambda n, p: (n, 0, p)),
                pl.BlockSpec((1, 1, tile_hw), lambda n, p: (n, 0, p)),
            ],
            out_specs=[
                pl.BlockSpec((1, 1, 1), lambda n, p: (n, 0, 0)),
                pl.BlockSpec((1, 1, 1), lambda n, p: (n, 0, 0)),
            ],
            scratch_shapes=[
                pltpu.VMEM((1, 1, tile_hw), jnp.float32),
                pltpu.VMEM((1, 1, tile_hw), jnp.float32),
            ],
        ),
        compiler_params=pltpu.CompilerParams(
            # Images are independent -> shard the N axis across v7x's two TensorCores;
            # the pixel-tile axis carries the per-image running reduction.
            dimension_semantics=("parallel", "arbitrary"),
        ),
    )(x, t)

    # reduction='mean' with ignore_index: sum of per-pixel NLL / number of valid pixels.
    # (An all-ignored input yields 0/0 = NaN, matching PyTorch.)
    return jnp.sum(loss_sum) / jnp.sum(valid_cnt)


def _reference(logits_nchw, targets_nhw):
    # Pure-JAX reference for sanity checking.
    N, C, H, W = logits_nchw.shape
    x = jnp.transpose(logits_nchw, (0, 2, 3, 1)).reshape(-1, C).astype(jnp.float32)
    t = targets_nhw.reshape(-1).astype(jnp.int32)
    lse = jax.scipy.special.logsumexp(x, axis=-1)
    safe_t = jnp.where(t == IGNORE_INDEX, 0, t)
    logit_t = jnp.take_along_axis(x, safe_t[:, None], axis=-1)[:, 0]
    valid = (t != IGNORE_INDEX).astype(jnp.float32)
    return jnp.sum((lse - logit_t) * valid) / jnp.sum(valid)


if __name__ == "__main__":
    key = jax.random.PRNGKey(0)
    k1, k2, k3 = jax.random.split(key, 3)

    N, C, H, W = 2, 4, 16, 16
    inputs = jax.random.normal(k1, (N, C, H, W), dtype=jnp.float32)
    targets = jax.random.randint(k2, (N, H, W), 0, C, dtype=jnp.int32)
    # sprinkle some ignore_index pixels
    ignore_mask = jax.random.uniform(k3, (N, H, W)) < 0.1
    targets = jnp.where(ignore_mask, IGNORE_INDEX, targets)

    loss = cross_entropy_loss(inputs, targets)
    loss = jax.block_until_ready(loss)

    ref = _reference(inputs, targets)
    assert jnp.allclose(loss, ref, atol=1e-5, rtol=1e-5), (loss, ref)

    print("KERNEL_OK")
</pallas_src>

<mosaic_0001>
module attributes {stable_mosaic.version = 11 : i64} {
  func.func @_ce_kernel(%arg0: i32, %arg1: i32, %arg2: memref<1x4x256xf32, #tpu.memory_space<vmem>>, %arg3: memref<1x1x256xi32, #tpu.memory_space<vmem>>, %arg4: memref<1x1x1xf32, #tpu.memory_space<vmem>>, %arg5: memref<1x1x1xf32, #tpu.memory_space<vmem>>, %arg6: memref<1x1x256xf32, #tpu.memory_space<vmem>>, %arg7: memref<1x1x256xf32, #tpu.memory_space<vmem>>) attributes {dimension_semantics = [#tpu.dimension_semantics<parallel>, #tpu.dimension_semantics<arbitrary>], iteration_bounds = array<i64: 2, 1>, scalar_prefetch = 0 : i64, scratch_operands = 2 : i64, tpu.core_type = #tpu.core_type<tc>, window_params = [{transform_indices = @transform_0, window_bounds = array<i64: 1, 4, 256>}, {transform_indices = @transform_1, window_bounds = array<i64: 1, 1, 256>}, {transform_indices = @transform_2, window_bounds = array<i64: 1, 1, 1>}, {transform_indices = @transform_3, window_bounds = array<i64: 1, 1, 1>}]} {
    %c0_i32 = arith.constant 0 : i32
    %0 = arith.cmpi eq, %arg1, %c0_i32 : i32
    %1 = arith.extui %0 : i1 to i32
    %c0_i32_0 = arith.constant 0 : i32
    %2 = arith.cmpi ne, %1, %c0_i32_0 : i32
    scf.if %2 {
      %cst_27 = arith.constant 0.000000e+00 : f32
      %68 = vector.broadcast %cst_27 : f32 to vector<1x1x256xf32>
      %c0_28 = arith.constant 0 : index
      %c0_29 = arith.constant 0 : index
      %c0_30 = arith.constant 0 : index
      %69 = vector.load %arg6[%c0_28, %c0_29, %c0_30] : memref<1x1x256xf32, #tpu.memory_space<vmem>>, vector<1x1x256xf32>
      tpu.vector_store %arg6[%c0_28, %c0_29, %c0_30], %68 {strides = array<i32>} : memref<1x1x256xf32, #tpu.memory_space<vmem>>, vector<1x1x256xf32>,
      %cst_31 = arith.constant 0.000000e+00 : f32
      %70 = vector.broadcast %cst_31 : f32 to vector<1x1x256xf32>
      %c0_32 = arith.constant 0 : index
      %c0_33 = arith.constant 0 : index
      %c0_34 = arith.constant 0 : index
      %71 = vector.load %arg7[%c0_32, %c0_33, %c0_34] : memref<1x1x256xf32, #tpu.memory_space<vmem>>, vector<1x1x256xf32>
      tpu.vector_store %arg7[%c0_32, %c0_33, %c0_34], %70 {strides = array<i32>} : memref<1x1x256xf32, #tpu.memory_space<vmem>>, vector<1x1x256xf32>,
    } else {
    }
    %c0 = arith.constant 0 : index
    %c0_1 = arith.constant 0 : index
    %c0_2 = arith.constant 0 : index
    %3 = vector.load %arg2[%c0, %c0_1, %c0_2] : memref<1x4x256xf32, #tpu.memory_space<vmem>>, vector<1x4x256xf32>
    %c0_3 = arith.constant 0 : index
    %c0_4 = arith.constant 0 : index
    %c0_5 = arith.constant 0 : index
    %4 = vector.load %arg3[%c0_3, %c0_4, %c0_5] : memref<1x1x256xi32, #tpu.memory_space<vmem>>, vector<1x1x256xi32>
    %5 = vector.extract_strided_slice %3 {offsets = [0, 0, 0], sizes = [1, 1, 256], strides = [1, 1, 1]} : vector<1x4x256xf32> to vector<1x1x256xf32>
    %6 = vector.extract_strided_slice %3 {offsets = [0, 1, 0], sizes = [1, 1, 256], strides = [1, 1, 1]} : vector<1x4x256xf32> to vector<1x1x256xf32>
    %7 = arith.maximumf %5, %6 : vector<1x1x256xf32>
    %8 = vector.extract_strided_slice %3 {offsets = [0, 2, 0], sizes = [1, 1, 256], strides = [1, 1, 1]} : vector<1x4x256xf32> to vector<1x1x256xf32>
    %9 = arith.maximumf %7, %8 : vector<1x1x256xf32>
    %10 = vector.extract_strided_slice %3 {offsets = [0, 3, 0], sizes = [1, 1, 256], strides = [1, 1, 1]} : vector<1x4x256xf32> to vector<1x1x256xf32>
    %11 = arith.maximumf %9, %10 : vector<1x1x256xf32>
    %cst = arith.constant 0.000000e+00 : f32
    %12 = vector.broadcast %cst : f32 to vector<1x1x256xf32>
    %cst_6 = arith.constant 0.000000e+00 : f32
    %13 = vector.broadcast %cst_6 : f32 to vector<1x1x256xf32>
    %14 = vector.extract_strided_slice %3 {offsets = [0, 0, 0], sizes = [1, 1, 256], strides = [1, 1, 1]} : vector<1x4x256xf32> to vector<1x1x256xf32>
    %15 = arith.subf %14, %11 : vector<1x1x256xf32>
    %16 = math.exp %15 : vector<1x1x256xf32>
    %17 = arith.addf %12, %16 : vector<1x1x256xf32>
    %c0_i32_7 = arith.constant 0 : i32
    %18 = vector.broadcast %c0_i32_7 : i32 to vector<1x1x256xi32>
    %19 = arith.cmpi eq, %4, %18 : vector<1x1x256xi32>
    %cst_8 = arith.constant 0.000000e+00 : f32
    %20 = vector.broadcast %cst_8 : f32 to vector<1x1x256xf32>
    %21 = arith.select %19, %14, %20 : vector<1x1x256xi1>, vector<1x1x256xf32>
    %22 = arith.addf %13, %21 : vector<1x1x256xf32>
    %23 = vector.extract_strided_slice %3 {offsets = [0, 1, 0], sizes = [1, 1, 256], strides = [1, 1, 1]} : vector<1x4x256xf32> to vector<1x1x256xf32>
    %24 = arith.subf %23, %11 : vector<1x1x256xf32>
    %25 = math.exp %24 : vector<1x1x256xf32>
    %26 = arith.addf %17, %25 : vector<1x1x256xf32>
    %c1_i32 = arith.constant 1 : i32
    %27 = vector.broadcast %c1_i32 : i32 to vector<1x1x256xi32>
    %28 = arith.cmpi eq, %4, %27 : vector<1x1x256xi32>
    %cst_9 = arith.constant 0.000000e+00 : f32
    %29 = vector.broadcast %cst_9 : f32 to vector<1x1x256xf32>
    %30 = arith.select %28, %23, %29 : vector<1x1x256xi1>, vector<1x1x256xf32>
    %31 = arith.addf %22, %30 : vector<1x1x256xf32>
    %32 = vector.extract_strided_slice %3 {offsets = [0, 2, 0], sizes = [1, 1, 256], strides = [1, 1, 1]} : vector<1x4x256xf32> to vector<1x1x256xf32>
    %33 = arith.subf %32, %11 : vector<1x1x256xf32>
    %34 = math.exp %33 : vector<1x1x256xf32>
    %35 = arith.addf %26, %34 : vector<1x1x256xf32>
    %c2_i32 = arith.constant 2 : i32
    %36 = vector.broadcast %c2_i32 : i32 to vector<1x1x256xi32>
    %37 = arith.cmpi eq, %4, %36 : vector<1x1x256xi32>
    %cst_10 = arith.constant 0.000000e+00 : f32
    %38 = vector.broadcast %cst_10 : f32 to vector<1x1x256xf32>
    %39 = arith.select %37, %32, %38 : vector<1x1x256xi1>, vector<1x1x256xf32>
    %40 = arith.addf %31, %39 : vector<1x1x256xf32>
    %41 = vector.extract_strided_slice %3 {offsets = [0, 3, 0], sizes = [1, 1, 256], strides = [1, 1, 1]} : vector<1x4x256xf32> to vector<1x1x256xf32>
    %42 = arith.subf %41, %11 : vector<1x1x256xf32>
    %43 = math.exp %42 : vector<1x1x256xf32>
    %44 = arith.addf %35, %43 : vector<1x1x256xf32>
    %c3_i32 = arith.constant 3 : i32
    %45 = vector.broadcast %c3_i32 : i32 to vector<1x1x256xi32>
    %46 = arith.cmpi eq, %4, %45 : vector<1x1x256xi32>
    %cst_11 = arith.constant 0.000000e+00 : f32
    %47 = vector.broadcast %cst_11 : f32 to vector<1x1x256xf32>
    %48 = arith.select %46, %41, %47 : vector<1x1x256xi1>, vector<1x1x256xf32>
    %49 = arith.addf %40, %48 : vector<1x1x256xf32>
    %c255_i32 = arith.constant 255 : i32
    %50 = vector.broadcast %c255_i32 : i32 to vector<1x1x256xi32>
    %51 = arith.cmpi ne, %4, %50 : vector<1x1x256xi32>
    %52 = arith.subf %11, %49 : vector<1x1x256xf32>
    %53 = math.log %44 : vector<1x1x256xf32>
    %54 = arith.addf %52, %53 : vector<1x1x256xf32>
    %cst_12 = arith.constant 0.000000e+00 : f32
    %55 = vector.broadcast %cst_12 : f32 to vector<1x1x256xf32>
    %56 = arith.select %51, %54, %55 : vector<1x1x256xi1>, vector<1x1x256xf32>
    %c0_13 = arith.constant 0 : index
    %c0_14 = arith.constant 0 : index
    %c0_15 = arith.constant 0 : index
    %57 = vector.load %arg6[%c0_13, %c0_14, %c0_15] : memref<1x1x256xf32, #tpu.memory_space<vmem>>, vector<1x1x256xf32>
    %58 = arith.addf %57, %56 : vector<1x1x256xf32>
    %c0_16 = arith.constant 0 : index
    %c0_17 = arith.constant 0 : index
    %c0_18 = arith.constant 0 : index
    %59 = vector.load %arg6[%c0_16, %c0_17, %c0_18] : memref<1x1x256xf32, #tpu.memory_space<vmem>>, vector<1x1x256xf32>
    tpu.vector_store %arg6[%c0_16, %c0_17, %c0_18], %58 {strides = array<i32>} : memref<1x1x256xf32, #tpu.memory_space<vmem>>, vector<1x1x256xf32>,
    %c0_19 = arith.constant 0 : index
    %c0_20 = arith.constant 0 : index
    %c0_21 = arith.constant 0 : index
    %60 = vector.load %arg7[%c0_19, %c0_20, %c0_21] : memref<1x1x256xf32, #tpu.memory_space<vmem>>, vector<1x1x256xf32>
    %61 = arith.extui %51 : vector<1x1x256xi1> to vector<1x1x256xi32>
    %62 = arith.sitofp %61 : vector<1x1x256xi32> to vector<1x1x256xf32>
    %63 = arith.addf %60, %62 : vector<1x1x256xf32>
    %c0_22 = arith.constant 0 : index
    %c0_23 = arith.constant 0 : index
    %c0_24 = arith.constant 0 : index
    %64 = vector.load %arg7[%c0_22, %c0_23, %c0_24] : memref<1x1x256xf32, #tpu.memory_space<vmem>>, vector<1x1x256xf32>
    tpu.vector_store %arg7[%c0_22, %c0_23, %c0_24], %63 {strides = array<i32>} : memref<1x1x256xf32, #tpu.memory_space<vmem>>, vector<1x1x256xf32>,
    %c0_i32_25 = arith.constant 0 : i32
    %65 = arith.cmpi eq, %arg1, %c0_i32_25 : i32
    %66 = arith.extui %65 : i1 to i32
    %c0_i32_26 = arith.constant 0 : i32
    %67 = arith.cmpi ne, %66, %c0_i32_26 : i32
    scf.if %67 {
      %c0_27 = arith.constant 0 : index
      %c0_28 = arith.constant 0 : index
      %c0_29 = arith.constant 0 : index
      %68 = vector.load %arg6[%c0_27, %c0_28, %c0_29] : memref<1x1x256xf32, #tpu.memory_space<vmem>>, vector<1x1x256xf32>
      %69 = vector.shape_cast %68 : vector<1x1x256xf32> to vector<1x1x1x256xf32>
      %cst_30 = arith.constant dense<0.000000e+00> : vector<1xf32>
      %70 = vector.multi_reduction <add>, %69, %cst_30 [1, 2, 3] : vector<1x1x1x256xf32> to vector<1xf32>
      %71 = vector.shape_cast %70 : vector<1xf32> to vector<1x1x1x1xf32>
      %72 = vector.extract %71[0, 0, 0, 0] : f32 from vector<1x1x1x1xf32>
      %73 = vector.broadcast %72 : f32 to vector<1x1x1xf32>
      %c0_31 = arith.constant 0 : index
      %c0_32 = arith.constant 0 : index
      %c0_33 = arith.constant 0 : index
      %74 = vector.load %arg4[%c0_31, %c0_32, %c0_33] : memref<1x1x1xf32, #tpu.memory_space<vmem>>, vector<1x1x1xf32>
      tpu.vector_store %arg4[%c0_31, %c0_32, %c0_33], %73 {strides = array<i32>} : memref<1x1x1xf32, #tpu.memory_space<vmem>>, vector<1x1x1xf32>,
      %c0_34 = arith.constant 0 : index
      %c0_35 = arith.constant 0 : index
      %c0_36 = arith.constant 0 : index
      %75 = vector.load %arg7[%c0_34, %c0_35, %c0_36] : memref<1x1x256xf32, #tpu.memory_space<vmem>>, vector<1x1x256xf32>
      %76 = vector.shape_cast %75 : vector<1x1x256xf32> to vector<1x1x1x256xf32>
      %cst_37 = arith.constant dense<0.000000e+00> : vector<1xf32>
      %77 = vector.multi_reduction <add>, %76, %cst_37 [1, 2, 3] : vector<1x1x1x256xf32> to vector<1xf32>
      %78 = vector.shape_cast %77 : vector<1xf32> to vector<1x1x1x1xf32>
      %79 = vector.extract %78[0, 0, 0, 0] : f32 from vector<1x1x1x1xf32>
      %80 = vector.broadcast %79 : f32 to vector<1x1x1xf32>
      %c0_38 = arith.constant 0 : index
      %c0_39 = arith.constant 0 : index
      %c0_40 = arith.constant 0 : index
      %81 = vector.load %arg5[%c0_38, %c0_39, %c0_40] : memref<1x1x1xf32, #tpu.memory_space<vmem>>, vector<1x1x1xf32>
      tpu.vector_store %arg5[%c0_38, %c0_39, %c0_40], %80 {strides = array<i32>} : memref<1x1x1xf32, #tpu.memory_space<vmem>>, vector<1x1x1xf32>,
    } else {
    }
    return
  }
  func.func @transform_0(%arg0: i32, %arg1: i32) -> (i32, i32, i32) {
    %c0_i32 = arith.constant 0 : i32
    %c0_i32_0 = arith.constant 0 : i32
    return %arg0, %c0_i32, %arg1 : i32, i32, i32
  }
  func.func @transform_1(%arg0: i32, %arg1: i32) -> (i32, i32, i32) {
    %c0_i32 = arith.constant 0 : i32
    %c0_i32_0 = arith.constant 0 : i32
    return %arg0, %c0_i32, %arg1 : i32, i32, i32
  }
  func.func @transform_2(%arg0: i32, %arg1: i32) -> (i32, i32, i32) {
    %c0_i32 = arith.constant 0 : i32
    %c0_i32_0 = arith.constant 0 : i32
    %c0_i32_1 = arith.constant 0 : i32
    return %arg0, %c0_i32, %c0_i32_0 : i32, i32, i32
  }
  func.func @transform_3(%arg0: i32, %arg1: i32) -> (i32, i32, i32) {
    %c0_i32 = arith.constant 0 : i32
    %c0_i32_0 = arith.constant 0 : i32
    %c0_i32_1 = arith.constant 0 : i32
    return %arg0, %c0_i32, %c0_i32_0 : i32, i32, i32
  }
}

</mosaic_0001>

<bundles_post_ra>
// kernel: tpu_custom_call.1
= control target key start
LH: loop header
LB: loop body
LE: loop exit
PB: predicated region body
PF: predicated region fallthrough
CT: control target
= control target key end

     0   :  { %9 = vsyncpa [#allocation5], 0  ;;  %s900_s0 = inlined_call_operand.hbm [shape: f32[2,4,256], index: 0, kind: input, shape index: {}]   ;;  %s901_s1 = inlined_call_operand.hbm [shape: s32[2,1,256], index: 1, kind: input, shape index: {}]   ;;  %s902_s2 = inlined_call_operand.vmem [shape: f32[2,1,1], index: 2, kind: output, shape index: {0}]   ;;  %s903_s3 = inlined_call_operand.vmem [shape: f32[2,1,1], index: 3, kind: output, shape index: {1}]  }
   0x1   :  { %11 = vsyncpa [#allocation5 + $0x1], 0 }
   0x2   :  { %12 = vsyncpa [#allocation7], 0 }
   0x3   :  { %14 = vsyncpa [#allocation7 + $0x1], 0  ;;  %s773_s12 = smov 0   ;;  %s775_s13 = smov 0  }
   0x4   :  { %s777_s14 = smov 0   ;;  %s779_s15 = smov 0  }
   0x5   :  { %s781_s16 = smov 0   ;;  %s783_s17 = smov 0  }
   0x6 LB: > { %s537_s18 = sadd.s32 4294967295, %s749_s17   ;;  %s32_s19 = sadd.s32 1, %s745_s16  ;;  %s749_s17 = sphi %s783_s17, %s20_s17   ;;  %s745_s16 = sphi %s781_s16, %s913_s16   ;;  %s741_s15 = sphi %s779_s15, %s912_s15   ;;  %s737_s14 = sphi %s777_s14, %s911_s14   ;;  %s733_s13 = sphi %s775_s13, %s910_s13   ;;  %s729_s12 = sphi %s773_s12, %s909_s12  }
   0x7   : > { %p34_p0 = scmp.ge.s32.totalorder %s32_s19, 2  ;;  %s41_s20 = sadd.s32 1, %s737_s14 }
   0x8   : > { %p48_p1 = scmp.ne.s32.totalorder %s737_s14, %s733_s13  ;;  %p49_p2 = scmp.eq.s32.totalorder %s749_s17, 0 }
   0x9   : > { %s915_s19 = smov (%p34_p0, %s32_s19), 0  ;;  %p54_p4 = scmp.ne.s32.totalorder %s733_s13, %s729_s12 }
   0xa   : > { %p809_p3 = por %p49_p2, %p48_p1  ;;  %s36_s22 = ssub.s32 %s745_s16, %s915_s19 }
   0xb   : > { %p55_p5 = scmp.eq.s32.totalorder %s537_s18, 0  ;;  %p39_p6 = scmp.eq.s32.totalorder %s36_s22, 0 }
   0xc   : > { %p574_p8 = scmp.lt.s32.totalorder %s749_s17, 2  ;;  %s158_s25 = sand.u32 1, %s737_s14  }
   0xd   : > { %p816_p7 = por %p55_p5, %p54_p4  ;;  %s558_s26 = sshll.u32 %s745_s16, 3 }
   0xe   : > { %s822_s24 = scalar_select %p39_p6, %s737_s14, %s41_s20  }
   0xf   : > { %s541_s27 = sshll.u32 %s158_s25, 3  ;;  %s169_s30 = scalar_lea.hbm %s900_s0, %s558_s26 }
  0x10   : > { %s171_s4 = sshll.u32 %s169_s30, 4  ;;  %s162_s5 = scalar_lea.vmem [#allocation4], %s541_s27  ;;  %s172_s4 = int_to_ptr.hbm [resolvable:$true] %s171_s4 }
  0x11   : > { %s173_s6 = sshll.u32 %s162_s5, 4  ;;  %p831_p9 = pnand %p574_p8, %p809_p3  ;;  %s174_s6 = int_to_ptr.vmem [resolvable:$true] %s173_s6 }
  0x12   : > { %p546_p10 = scmp.ge.s32.totalorder %s749_s17, 1  ;;  %p199_p11 = scmp.lt.s32.totalorder %s749_s17, 3 }
  0x13   : > { %s544_s8 = sshll.u32 %s158_s25, 1  ;;  %s159_s9 = scalar_lea.sflag [#allocation5], %s158_s25 }
  0x14   : > { %570 = dma.hbm_to_vmem [thread:$0]  (!%p831_p9), %s172_s4, 128, %s174_s6, %s159_s9  }
  0x15   : > { %p200_p12 = pnand %p546_p10, %p199_p11  ;;  %s545_s10 = sshll.u32 %s745_s16, 1 }
  0x16   : > { %s184_s11 = scalar_lea.vmem [#allocation6], %s544_s8  ;;  %s190_s21 = scalar_lea.hbm %s901_s1, %s545_s10 }
  0x17   : > { %s194_s12 = sshll.u32 %s184_s11, 4  ;;  %s192_s22 = sshll.u32 %s190_s21, 4  ;;  %s195_s12 = int_to_ptr.vmem [resolvable:$true] %s194_s12  ;;  %s193_s22 = int_to_ptr.hbm [resolvable:$true] %s192_s22 }
  0x18   : > { %s181_s26 = scalar_lea.sflag [#allocation7], %s158_s25  ;;  %203 = sbr.rel (%p200_p12) target bundleno = 281 (0x119), region = 28 }
  0x19   : > { %573 = dma.hbm_to_vmem [thread:$0]  (!%p831_p9), %s193_s22, 32, %s195_s12, %s181_s26  }
  0x1a   : > { %s205_s27 = sand.u32 (!%p200_p12), 1, %s733_s13  }
  0x1b   : > { %s547_s28 = sshll.u32 (!%p200_p12), %s205_s27, 3  ;;  %s206_s29 = scalar_lea.sflag (!%p200_p12), [#allocation5], %s205_s27 }
  0x1c   : > { %s209_s30 = scalar_lea.vmem (!%p200_p12), [#allocation4], %s547_s28 }
  0x1d   : > { %720 = dma.done.wait (%p816_p7), %s206_s29, 128  }
  0x1e   : > { %722 = vsyncadd (%p816_p7), %s206_s29, 4294967168  ;;  %s548_s4 = sshll.u32 %s205_s27, 1  ;;  %s216_s5 = scalar_lea.sflag [#allocation7], %s205_s27 }
  0x1f   : > { %s219_s6 = scalar_lea.vmem [#allocation6], %s548_s4 }
  0x20   : > { %724 = dma.done.wait (%p816_p7), %s216_s5, 32  }
  0x21   : > { %726 = vsyncadd (%p816_p7), %s216_s5, 4294967264  ;;  %v261_v0 = vlaneseq  ;;  %v751_v2 = vmov 0.0   ;;  %v267_v3 = vld [vmem:[%s209_s30] sm:$0xff]  ;;  %v268_v11 = vld [vmem:[%s219_s6] sm:$0x3]  ;;  %vm288_vm1 = vcmask 1040384  }
  0x22   : > { %v549_v4 = vrot.slane %v267_v3, 9  ;;  %v550_v5 = vrot.slane %v267_v3, 10  ;;  %305 = vst [vmem:[#allocation1] sm:$0xff] %v267_v3  ;;  %v551_v7 = vrot.slane %v267_v3, 11  ;;  %v287_v13 = vrot.slane %v267_v3, 3  ;;  %p251_p13 = scmp.lt.s32.totalorder %s741_s15, 1 }
  0x23   : > { %vm854_vm0 = vcmp.lt.s32.totalorder %v261_v0, 256  ;;  %vm286_vm2 = vcmp.eq.s32.totalorder %v268_v11, 0  ;;  %vm304_vm3 = vcmp.eq.s32.totalorder %v268_v11, 1  ;;  %vm345_vm4 = vcmp.ne.s32.totalorder %v268_v11, 255 }
  0x24   : > { %265 = vst.msk [vmem:[#allocation2] sm:$0x3] %vm854_vm0, %v751_v2  ;;  %v273_v6 = vmax.f32 %v267_v3, %v549_v4  ;;  %v289_v21 = vsel %vm288_vm1, %v267_v3, %v287_v13  ;;  %v555_v26 = vsel %vm345_vm4, 1.0, %v751_v2  ;;  %vm321_vm5 = vcmp.eq.s32.totalorder %v268_v11, 2  ;;  %s917_s15 = smov (!%p251_p13, %s741_s15), 1 }
  0x25   : > { %266 = vst.msk [vmem:[#allocation3] sm:$0x3] %vm854_vm0, %v751_v2  ;;  %v291_v27 = vsel %vm286_vm2, %v289_v21, 0.0  ;;  %vm338_vm6 = vcmp.eq.s32.totalorder %v268_v11, 3  ;;  %v752_v40 = vmov 286326784   ;;  %s253_s7 = scalar_lea.vmem %s902_s2, %s917_s15  ;;  %vm395_vm7 = vcmask 0   ;;  %s256_s11 = scalar_lea.vmem %s903_s3, %s917_s15 }
  0x26   : > { %v277_v8 = vmax.f32 %v273_v6, %v550_v5  ;;  %v348_v41 = vunpack.c.l.s4 %v752_v40 }
  0x28   : > { %v281_v9 = vmax.f32 %v277_v8, %v551_v7  ;;  %v349_v48 = vunpack.c.0.s8 %v348_v41 }
  0x29   : > { %v307_v10 = vld [vmem:[#allocation1 + $0x1] ss:$4 sm:$0xff] }
  0x2a   : > { %v282_v12 = vsub.f32 %v267_v3, %v281_v9  ;;  %v294_v14 = vrot.slane %v281_v9, 7  ;;  %v311_v15 = vrot.slane %v281_v9, 6  ;;  %322 = vst [vmem:[#allocation1] sm:$0xff] %v267_v3  ;;  %v328_v16 = vrot.slane %v281_v9, 5 }
  0x2b   : > { %v309_v28 = vsel %vm304_vm3, %v307_v10, 0.0  ;;  %v361_v56 = vld [vmem:[#allocation2] sm:$0x3] }
  0x2c   : > { %v283_v17 = vmul.f32 1.442695, %v282_v12  ;;  %v296_v18 = vsub.f32 %v267_v3, %v294_v14  ;;  %v313_v19 = vsub.f32 %v267_v3, %v311_v15  ;;  %v330_v20 = vsub.f32 %v267_v3, %v328_v16  ;;  %v368_v25 = vld [vmem:[#allocation3] sm:$0x3] }
  0x2d   : > { %v371_v30 = vadd.f32 %v555_v26, %v368_v25  ;;  %v310_v31 = vadd.f32 %v309_v28, %v291_v27 }
  0x2e   : > { %v297_v22 = vmul.f32 1.442695, %v296_v18  ;;  %v314_v23 = vmul.f32 1.442695, %v313_v19  ;;  %625 = vpow2.f32 %v283_v17  ;;  %v331_v24 = vmul.f32 1.442695, %v330_v20 }
  0x2f   : > { %372 = vst.msk [vmem:[#allocation3] sm:$0x3] %vm854_vm0, %v371_v30 }
  0x30   : > { %627 = vpow2.f32 %v297_v22 }
  0x31   : > { %629 = vpow2.f32 %v314_v23  ;;  %v324_v29 = vld [vmem:[#allocation1 + $0x2] ss:$4 sm:$0xff] }
  0x32   : > { %631 = vpow2.f32 %v331_v24  ;;  %339 = vst [vmem:[#allocation1] sm:$0xff] %v267_v3  ;;  %v326_v33 = vsel %vm321_vm5, %v324_v29, 0.0 }
  0x33   : > { %v327_v39 = vadd.f32 %v326_v33, %v310_v31 }
  0x34   : > { %v626_v32 = vpop.eup %625 }
  0x36   : > { %v628_v34 = vpop.eup %627  ;;  %v397_v61 = vld [vmem:[#allocation3] sm:$0x3] }
  0x37   : > { %v630_v35 = vpop.eup %629  ;;  %v552_v36 = vrot.slane %v628_v34, 9  ;;  %v399_v3 = vperm.slane %v397_v61, 0  ;;  %v400_v4 = vperm.slane %v397_v61, 1 }
  0x38   : > { %v632_v37 = vpop.eup %631  ;;  %v553_v38 = vrot.slane %v630_v35, 10 }
  0x39   : > { %v303_v42 = vadd.f32 %v626_v32, %v552_v36  ;;  %v554_v43 = vrot.slane %v632_v37, 11  ;;  %v341_v44 = vld [vmem:[#allocation1 + $0x3] ss:$4 sm:$0xff]  ;;  %v403_v6 = vsel %vm288_vm1, %v399_v3, 0.0  ;;  %v404_v7 = vsel %vm288_vm1, %v400_v4, 0.0 }
  0x3a   : > { %v343_v45 = vsel %vm338_vm6, %v341_v44, 0.0  ;;  %v405_v8 = vadd.f32 %v404_v7, %v403_v6 }
  0x3b   : > { %v320_v46 = vadd.f32 %v553_v38, %v303_v42  ;;  %v344_v47 = vadd.f32 %v343_v45, %v327_v39 }
  0x3d   : > { %v337_v49 = vadd.f32 %v554_v43, %v320_v46  ;;  %v350_v50 = vperm.slane %v344_v47, %v349_v48 }
  0x3f   : > { %633 = vlog2.f32 %v337_v49  ;;  %v352_v51 = vsub.f32 %v281_v9, %v350_v50 }
  0x45   : > { %v634_v52 = vpop.eup %633 }
  0x46   : > { %v354_v53 = vmul.f32 0.6931472, %v634_v52 }
  0x48   : > { %v355_v54 = vadd.f32 %v354_v53, %v352_v51 }
  0x4a   : > { %v357_v55 = vrot.slane %v355_v54, 3 }
  0x4c   : > { %v358_v57 = vsel %vm288_vm1, %v355_v54, %v357_v55 }
  0x4d   : > { %v360_v58 = vsel %vm345_vm4, %v358_v57, 0.0 }
  0x4e   : > { %v362_v59 = vadd.f32 %v361_v56, %v360_v58 }
  0x50   : > { %367 = vst.msk [vmem:[#allocation2] sm:$0x3] %vm854_vm0, %v362_v59 }
  0x57   : > { %v376_v60 = vld [vmem:[#allocation2] sm:$0x3] }
  0x58   : > { %v378_v62 = vperm.slane %v376_v60, 0  ;;  %v379_v63 = vperm.slane %v376_v60, 1 }
  0x5a   : > { %v382_v0 = vsel %vm288_vm1, %v378_v62, 0.0  ;;  %v383_v2 = vsel %vm288_vm1, %v379_v63, 0.0 }
  0x5b   : > { %v384_v5 = vadd.f32 %v383_v2, %v382_v0 }
  0x5d   : > { %385 = vadd.xlane.f32.xlu0 %v384_v5 }
  0x65   : > { %406 = vadd.xlane.f32.xlu0 %v405_v8 }
  0xd0   : > { %v386_v1 = vpop.xlane.xlu0 %385 }
  0xd1   : > { %v387_v9 = vrot.slane %v386_v1, 4 }
  0xd3   : > { %v388_v10 = vadd.f32 %v387_v9, %v386_v1 }
  0xd5   : > { %v389_v11 = vrot.slane %v388_v10, 2 }
  0xd7   : > { %v390_v12 = vadd.f32 %v389_v11, %v388_v10 }
  0xd8   : > { %v407_v13 = vpop.xlane.xlu0 %406 }
  0xd9   : > { %v408_v14 = vrot.slane %v407_v13, 4  ;;  %v391_v15 = vrot.slane %v390_v12, 1 }
  0xdb   : > { %v409_v16 = vadd.f32 %v408_v14, %v407_v13  ;;  %v392_v17 = vadd.f32 %v391_v15, %v390_v12 }
  0xdd   : > { %v410_v18 = vrot.slane %v409_v16, 2  ;;  %559 = vpush %v392_v17 }
  0xdf   : > { %v411_v19 = vadd.f32 %v410_v18, %v409_v16 }
  0xe1   : > { %v412_v20 = vrot.slane %v411_v19, 1 }
  0xe3   : > { %v413_v21 = vadd.f32 %v412_v20, %v411_v19 }
  0xe5   : > { %561 = vpush %v413_v21 }
 0x10e   : > { %s560_s8 = spop %559 }
 0x10f   : > { %v394_v22 = vstv %s560_s8 }
 0x110   : > { %396 = vst.msk [vmem:[%s253_s7] sm:$0x1] %vm395_vm7, %v394_v22 }
 0x116   : > { %s562_s12 = spop %561 }
 0x117   : > { %v415_v23 = vstv %s562_s12 }
 0x118   : > { %416 = vst.msk [vmem:[%s256_s11] sm:$0x1] %vm395_vm7, %v415_v23 }
 0x119 PF: > { %s20_s17 = sadd.s32 1, %s749_s17   ;;  %s909_s12 = smov %s733_s13 }
 0x11a   : > { %p17_p0 = scmp.ge.s32.totalorder %s20_s17, 4   ;;  %s910_s13 = smov %s737_s14 }
 0x11b   : > { %s911_s14 = smov %s822_s24  ;;  %s912_s15 = smov %s745_s16 }
 0x11c   : > { %s913_s16 = smov %s915_s19  ;;  %19 = sbr.rel (!%p17_p0) target bundleno = 6 (0x6), region = 104 }
 0x121   :  { %446 = vsyncpa [#allocation5], 1 }
 0x122   :  { %448 = vsyncpa [#allocation5 + $0x1], 1 }
 0x123   :  { %449 = vsyncpa [#allocation7], 1 }
 0x124   :  { %451 = vsyncpa [#allocation7 + $0x1], 1 }

</bundles_post_ra>
